<compile_context>
chip_gen: v6e
topology: v6e:2x2x1
jax: 0.10.0
libtpu: 0.0.40
codegen_flags: <defaults>
</compile_context>

<pallas_src>
import jax
import jax.numpy as jnp
import numpy as np
from jax.experimental import pallas as pl
from jax.experimental.pallas import tpu as pltpu

HIDDEN = 150        # logical hidden width (nn.Linear(state, 150))
H_PAD = 256         # lane-aligned hidden width (zero-padded)
DEFAULT_TB = 2048   # max batch-tile rows (≈6-8 MiB live VMEM incl. double buffers)


def _round_up(x, m):
    return (x + m - 1) // m * m


def dqn_kernel(x_ref, w1_ref, b1_ref, w2_ref, b2_ref, w3_ref, b3_ref, o_ref):
    a_dim = o_ref.shape[-1]

    # Layer 1: Linear + Tanh.  bf16 operands -> native MXU path, f32 accumulate,
    # f32 bias add; tanh done on the bf16 value, which is also the operand for
    # the next matmul (EUP slot, ~free next to the MXU).
    x = x_ref[...].astype(jnp.bfloat16)
    z1 = jnp.dot(x, w1_ref[...], preferred_element_type=jnp.float32) + b1_ref[...]
    h1 = jnp.tanh(z1.astype(jnp.bfloat16))

    # Layer 2: Linear + Tanh
    z2 = jnp.dot(h1, w2_ref[...], preferred_element_type=jnp.float32) + b2_ref[...]
    h2 = jnp.tanh(z2.astype(jnp.bfloat16))

    # Layer 3: Linear (no activation) -> Q-values.  Compute in the padded
    # 128-wide space (MXU-aligned), store only the real action columns: the
    # narrow masked vst is a few bytes/row, vs. 512 B/row of padded f32.
    z3 = jnp.dot(h2, w3_ref[...], preferred_element_type=jnp.float32) + b3_ref[...]
    o_ref[...] = z3[:, :a_dim].astype(o_ref.dtype)


def init_params(key, state_dim, action_dim):
    """Deterministic init mimicking nn.Linear's U(-1/sqrt(fan_in), 1/sqrt(fan_in))."""
    ks = jax.random.split(key, 6)

    def lin(kw, kb, fan_in, fan_out):
        bound = 1.0 / np.sqrt(fan_in)
        w = jax.random.uniform(kw, (fan_in, fan_out), jnp.float32, -bound, bound)
        b = jax.random.uniform(kb, (1, fan_out), jnp.float32, -bound, bound)
        return w, b

    w1, b1 = lin(ks[0], ks[1], state_dim, HIDDEN)
    w2, b2 = lin(ks[2], ks[3], HIDDEN, HIDDEN)
    w3, b3 = lin(ks[4], ks[5], HIDDEN, action_dim)
    return {"w1": w1, "b1": b1, "w2": w2, "b2": b2, "w3": w3, "b3": b3}


def pad_params(params):
    """Zero-pad (state->8k, 150->256, action->128) and cast weights to bf16,
    once, outside the hot path.  Zero rows/cols are exact no-ops; biases stay
    f32 (added to the f32 accumulator)."""
    w1, b1 = params["w1"], params["b1"]
    w2, b2 = params["w2"], params["b2"]
    w3, b3 = params["w3"], params["b3"]
    state_dim = w1.shape[0]
    action_dim = w3.shape[1]
    s_pad = _round_up(state_dim, 8)
    a_pad = _round_up(action_dim, 128)

    w1p = jnp.pad(w1, ((0, s_pad - state_dim), (0, H_PAD - HIDDEN))).astype(jnp.bfloat16)
    b1p = jnp.pad(b1, ((0, 0), (0, H_PAD - HIDDEN)))
    w2p = jnp.pad(w2, ((0, H_PAD - HIDDEN), (0, H_PAD - HIDDEN))).astype(jnp.bfloat16)
    b2p = jnp.pad(b2, ((0, 0), (0, H_PAD - HIDDEN)))
    w3p = jnp.pad(w3, ((0, H_PAD - HIDDEN), (0, a_pad - action_dim))).astype(jnp.bfloat16)
    b3p = jnp.pad(b3, ((0, 0), (0, a_pad - action_dim)))
    return {
        "w1": w1p, "b1": b1p,
        "w2": w2p, "b2": b2p,
        "w3": w3p, "b3": b3p,
        "state_dim": state_dim,
        "action_dim": action_dim,
    }


def dqn_forward(x, padded, *, tile_b=DEFAULT_TB):
    """x: (B, state_dim) float32.  padded: output of pad_params()."""
    w1, b1 = padded["w1"], padded["b1"]
    w2, b2 = padded["w2"], padded["b2"]
    w3, b3 = padded["w3"], padded["b3"]
    action_dim = padded["action_dim"]

    B, state_dim = x.shape
    s_pad = w1.shape[0]
    a_pad = w3.shape[1]

    # Batch tiling: big tiles to amortize per-grid-step overhead, but split the
    # batch into >= 2 steps whenever it has more than one sublane-tile of rows,
    # so dimension_semantics=("parallel",) can shard it across v7x's two TCs.
    tb = min(tile_b, max(8, _round_up(pl.cdiv(B, 2), 8)))
    b_pad = _round_up(B, tb)
    if b_pad != B or s_pad != state_dim:
        x = jnp.pad(x, ((0, b_pad - B), (0, s_pad - state_dim)))
    grid = (b_pad // tb,)

    resident = lambda a: pl.BlockSpec(a.shape, lambda i: (0, 0))

    cost = pl.CostEstimate(
        flops=2 * b_pad * (s_pad * H_PAD + H_PAD * H_PAD + H_PAD * a_pad),
        transcendentals=2 * b_pad * H_PAD,
        bytes_accessed=(
            4 * b_pad * s_pad                                  # x (f32 in HBM)
            + 2 * (w1.size + w2.size + w3.size)                # bf16 weights
            + 4 * (b1.size + b2.size + b3.size)                # f32 biases
            + 4 * b_pad * action_dim                           # unpadded f32 out
        ),
    )

    out = pl.pallas_call(
        dqn_kernel,
        out_shape=jax.ShapeDtypeStruct((b_pad, action_dim), jnp.float32),
        grid=grid,
        in_specs=[
            pl.BlockSpec((tb, s_pad), lambda i: (i, 0)),       # x: batch-tiled
            resident(w1), resident(b1),
            resident(w2), resident(b2),
            resident(w3), resident(b3),
        ],
        out_specs=pl.BlockSpec((tb, action_dim), lambda i: (i, 0)),
        compiler_params=pltpu.CompilerParams(
            dimension_semantics=("parallel",),                 # shard batch across TCs
        ),
        cost_estimate=cost,
    )(x, w1, b1, w2, b2, w3, b3)

    # Only batch padding (if any) needs stripping; action columns are already exact.
    return out if b_pad == B else out[:B]


def dqn_reference(x, p):
    h1 = jnp.tanh(x @ p["w1"] + p["b1"])
    h2 = jnp.tanh(h1 @ p["w2"] + p["b2"])
    return h2 @ p["w3"] + p["b3"]


if __name__ == "__main__":
    key = jax.random.PRNGKey(0)
    k_x, k_p = jax.random.split(key)

    batch, state_dim, action_dim = 8, 4, 2
    x = jax.random.normal(k_x, (batch, state_dim), jnp.float32)
    params = init_params(k_p, state_dim, action_dim)
    padded = pad_params(params)   # done once, outside the hot path

    out = dqn_forward(x, padded)
    jax.block_until_ready(out)

    ref = dqn_reference(x, params)  # f32 reference; kernel uses bf16 MXU operands
    np.testing.assert_allclose(np.asarray(out), np.asarray(ref),
                               rtol=2e-2, atol=2e-2)
    print("KERNEL_OK")
</pallas_src>

<mosaic_0001>
module attributes {stable_mosaic.version = 11 : i64} {
  func.func @dqn_kernel(%arg0: i32, %arg1: memref<8x8xf32, #tpu.memory_space<vmem>>, %arg2: memref<8x256xbf16, #tpu.memory_space<vmem>>, %arg3: memref<1x256xf32, #tpu.memory_space<vmem>>, %arg4: memref<256x256xbf16, #tpu.memory_space<vmem>>, %arg5: memref<1x256xf32, #tpu.memory_space<vmem>>, %arg6: memref<256x128xbf16, #tpu.memory_space<vmem>>, %arg7: memref<1x128xf32, #tpu.memory_space<vmem>>, %arg8: memref<8x2xf32, #tpu.memory_space<vmem>>) attributes {dimension_semantics = [#tpu.dimension_semantics<parallel>], iteration_bounds = array<i64: 1>, scalar_prefetch = 0 : i64, scratch_operands = 0 : i64, tpu.core_type = #tpu.core_type<tc>, window_params = [{transform_indices = @transform_0, window_bounds = array<i64: 8, 8>}, {pipeline_mode = #tpu.pipeline_mode<synchronous>, transform_indices = @transform_1, window_bounds = array<i64: 8, 256>}, {pipeline_mode = #tpu.pipeline_mode<synchronous>, transform_indices = @transform_2, window_bounds = array<i64: 1, 256>}, {pipeline_mode = #tpu.pipeline_mode<synchronous>, transform_indices = @transform_3, window_bounds = array<i64: 256, 256>}, {pipeline_mode = #tpu.pipeline_mode<synchronous>, transform_indices = @transform_4, window_bounds = array<i64: 1, 256>}, {pipeline_mode = #tpu.pipeline_mode<synchronous>, transform_indices = @transform_5, window_bounds = array<i64: 256, 128>}, {pipeline_mode = #tpu.pipeline_mode<synchronous>, transform_indices = @transform_6, window_bounds = array<i64: 1, 128>}, {transform_indices = @transform_7, window_bounds = array<i64: 8, 2>}]} {
    %c0 = arith.constant 0 : index
    %c0_0 = arith.constant 0 : index
    %0 = vector.load %arg1[%c0, %c0_0] : memref<8x8xf32, #tpu.memory_space<vmem>>, vector<8x8xf32>
    %1 = arith.truncf %0 : vector<8x8xf32> to vector<8x8xbf16>
    %c0_1 = arith.constant 0 : index
    %c0_2 = arith.constant 0 : index
    %2 = vector.load %arg2[%c0_1, %c0_2] : memref<8x256xbf16, #tpu.memory_space<vmem>>, vector<8x256xbf16>
    %cst = arith.constant dense<0.000000e+00> : vector<8x256xf32>
    %3 = tpu.matmul %1, %2, %cst {dimension_numbers = #tpu.dot_dimension_numbers<[1], [0], [0], [1], [0, 0, 1, 1], [], []>} : vector<8x8xbf16>, vector<8x256xbf16>, vector<8x256xf32> -> vector<8x256xf32>
    %c0_3 = arith.constant 0 : index
    %c0_4 = arith.constant 0 : index
    %4 = vector.load %arg3[%c0_3, %c0_4] : memref<1x256xf32, #tpu.memory_space<vmem>>, vector<1x256xf32>
    %5 = vector.broadcast %4 : vector<1x256xf32> to vector<8x256xf32>
    %6 = arith.addf %3, %5 : vector<8x256xf32>
    %7 = arith.truncf %6 : vector<8x256xf32> to vector<8x256xbf16>
    %8 = math.tanh %7 : vector<8x256xbf16>
    %c0_5 = arith.constant 0 : index
    %c0_6 = arith.constant 0 : index
    %9 = vector.load %arg4[%c0_5, %c0_6] : memref<256x256xbf16, #tpu.memory_space<vmem>>, vector<256x256xbf16>
    %cst_7 = arith.constant dense<0.000000e+00> : vector<8x256xf32>
    %10 = tpu.matmul %8, %9, %cst_7 {dimension_numbers = #tpu.dot_dimension_numbers<[1], [0], [0], [1], [0, 0, 1, 1], [], []>} : vector<8x256xbf16>, vector<256x256xbf16>, vector<8x256xf32> -> vector<8x256xf32>
    %c0_8 = arith.constant 0 : index
    %c0_9 = arith.constant 0 : index
    %11 = vector.load %arg5[%c0_8, %c0_9] : memref<1x256xf32, #tpu.memory_space<vmem>>, vector<1x256xf32>
    %12 = vector.broadcast %11 : vector<1x256xf32> to vector<8x256xf32>
    %13 = arith.addf %10, %12 : vector<8x256xf32>
    %14 = arith.truncf %13 : vector<8x256xf32> to vector<8x256xbf16>
    %15 = math.tanh %14 : vector<8x256xbf16>
    %c0_10 = arith.constant 0 : index
    %c0_11 = arith.constant 0 : index
    %16 = vector.load %arg6[%c0_10, %c0_11] : memref<256x128xbf16, #tpu.memory_space<vmem>>, vector<256x128xbf16>
    %cst_12 = arith.constant dense<0.000000e+00> : vector<8x128xf32>
    %17 = tpu.matmul %15, %16, %cst_12 {dimension_numbers = #tpu.dot_dimension_numbers<[1], [0], [0], [1], [0, 0, 1, 1], [], []>} : vector<8x256xbf16>, vector<256x128xbf16>, vector<8x128xf32> -> vector<8x128xf32>
    %c0_13 = arith.constant 0 : index
    %c0_14 = arith.constant 0 : index
    %18 = vector.load %arg7[%c0_13, %c0_14] : memref<1x128xf32, #tpu.memory_space<vmem>>, vector<1x128xf32>
    %19 = vector.broadcast %18 : vector<1x128xf32> to vector<8x128xf32>
    %20 = arith.addf %17, %19 : vector<8x128xf32>
    %21 = vector.extract_strided_slice %20 {offsets = [0, 0], sizes = [8, 2], strides = [1, 1]} : vector<8x128xf32> to vector<8x2xf32>
    %c0_15 = arith.constant 0 : index
    %c0_16 = arith.constant 0 : index
    %22 = vector.load %arg8[%c0_15, %c0_16] : memref<8x2xf32, #tpu.memory_space<vmem>>, vector<8x2xf32>
    tpu.vector_store %arg8[%c0_15, %c0_16], %21 {strides = array<i32>} : memref<8x2xf32, #tpu.memory_space<vmem>>, vector<8x2xf32>,
    return
  }
  func.func @transform_0(%arg0: i32) -> (i32, i32) {
    %c0_i32 = arith.constant 0 : i32
    %c0_i32_0 = arith.constant 0 : i32
    return %arg0, %c0_i32 : i32, i32
  }
  func.func @transform_1(%arg0: i32) -> (i32, i32) {
    %c0_i32 = arith.constant 0 : i32
    %c0_i32_0 = arith.constant 0 : i32
    %c0_i32_1 = arith.constant 0 : i32
    return %c0_i32, %c0_i32_0 : i32, i32
  }
  func.func @transform_2(%arg0: i32) -> (i32, i32) {
    %c0_i32 = arith.constant 0 : i32
    %c0_i32_0 = arith.constant 0 : i32
    %c0_i32_1 = arith.constant 0 : i32
    return %c0_i32, %c0_i32_0 : i32, i32
  }
  func.func @transform_3(%arg0: i32) -> (i32, i32) {
    %c0_i32 = arith.constant 0 : i32
    %c0_i32_0 = arith.constant 0 : i32
    %c0_i32_1 = arith.constant 0 : i32
    return %c0_i32, %c0_i32_0 : i32, i32
  }
  func.func @transform_4(%arg0: i32) -> (i32, i32) {
    %c0_i32 = arith.constant 0 : i32
    %c0_i32_0 = arith.constant 0 : i32
    %c0_i32_1 = arith.constant 0 : i32
    return %c0_i32, %c0_i32_0 : i32, i32
  }
  func.func @transform_5(%arg0: i32) -> (i32, i32) {
    %c0_i32 = arith.constant 0 : i32
    %c0_i32_0 = arith.constant 0 : i32
    %c0_i32_1 = arith.constant 0 : i32
    return %c0_i32, %c0_i32_0 : i32, i32
  }
  func.func @transform_6(%arg0: i32) -> (i32, i32) {
    %c0_i32 = arith.constant 0 : i32
    %c0_i32_0 = arith.constant 0 : i32
    %c0_i32_1 = arith.constant 0 : i32
    return %c0_i32, %c0_i32_0 : i32, i32
  }
  func.func @transform_7(%arg0: i32) -> (i32, i32) {
    %c0_i32 = arith.constant 0 : i32
    %c0_i32_0 = arith.constant 0 : i32
    return %arg0, %c0_i32 : i32, i32
  }
}

</mosaic_0001>

<bundles_post_ra>
// kernel: tpu_custom_call.1
= control target key start
LH: loop header
LB: loop body
LE: loop exit
PB: predicated region body
PF: predicated region fallthrough
CT: control target
= control target key end

     0   :  { %12 = vsyncpa [#allocation3], 0  ;;  %s904_s0 = inlined_call_operand.hbm [shape: f32[8,8], index: 0, kind: input, shape index: {}]   ;;  %s905_s1 = inlined_call_operand.hbm [shape: bf16[8,256], index: 1, kind: input, shape index: {}]   ;;  %s906_s2 = inlined_call_operand.vmem [shape: f32[1,256], index: 2, kind: input, shape index: {}]   ;;  %s907_s3 = inlined_call_operand.hbm [shape: bf16[256,256], index: 3, kind: input, shape index: {}]   ;;  %s908_s4 = inlined_call_operand.vmem [shape: f32[1,256], index: 4, kind: input, shape index: {}]   ;;  %s909_s5 = inlined_call_operand.hbm [shape: bf16[256,128], index: 5, kind: input, shape index: {}]   ;;  %s910_s6 = inlined_call_operand.vmem [shape: f32[1,128], index: 6, kind: input, shape index: {}]   ;;  %s911_s7 = inlined_call_operand.vmem [shape: f32[8,2], index: 7, kind: output, shape index: {}]  }
   0x1   :  { %13 = vsyncpa [#allocation5], 0 }
   0x2   :  { %14 = vsyncpa [#allocation8], 0  ;;  %s831_s24 = smov [#allocation4]   ;;  %s832_s26 = smov [#allocation2]  }
   0x3   :  { %s31_s25 = sshll.u32 %s831_s24, 4  ;;  %s21_s27 = sshll.u32 %s832_s26, 4  ;;  %s32_s25 = int_to_ptr.vmem [resolvable:$true] %s31_s25  ;;  %s22_s27 = int_to_ptr.vmem [resolvable:$true] %s21_s27 }
   0x4   :  { %s753_s28 = scalar_lea.vmem %s32_s25, 128  ;;  %p758_p1 = scmp.lt.s32.totalorder %s32_s25, %s32_s25 }
   0x5   :  { %p754_p0 = scmp.ne.s32.totalorder %s32_s25, %s753_s28  ;;  %p759_p2 = scmp.lt.s32.totalorder %s753_s28, %s753_s28 }
   0x7   :  { %p760_p3 = por %p759_p2, %p758_p1 }
   0x9   :  { %p761_p4 = pnand %p760_p3, %p754_p0 }
   0xb   :  { %764 = shalt.err (!%p761_p4)
}
   0xc   :  { %34 = dma.hbm_to_vmem [thread:$0]  %s905_s1, 128, %s32_s25, [#allocation5]  }
   0xd   :  { %s773_s8 = scalar_lea.vmem %s22_s27, 128  ;;  %p778_p6 = scmp.lt.s32.totalorder %s22_s27, %s22_s27 }
   0xe   :  { %p774_p5 = scmp.ne.s32.totalorder %s22_s27, %s773_s8  ;;  %p779_p7 = scmp.lt.s32.totalorder %s773_s8, %s773_s8 }
  0x10   :  { %p780_p8 = por %p779_p7, %p778_p6 }
  0x12   :  { %p781_p9 = pnand %p780_p8, %p774_p5 }
  0x14   :  { %784 = shalt.err (!%p781_p9)
}
  0x15   :  { %24 = dma.hbm_to_vmem [thread:$0]  %s904_s0, 128, %s22_s27, [#allocation3]  }
  0x16   :  { %s833_s11 = smov [#allocation6]  }
  0x17   :  { %s42_s12 = sshll.u32 %s833_s11, 4  ;;  %s43_s12 = int_to_ptr.vmem [resolvable:$true] %s42_s12 }
  0x18   :  { %s793_s13 = scalar_lea.vmem %s43_s12, 4096  ;;  %p798_p11 = scmp.lt.s32.totalorder %s43_s12, %s43_s12 }
  0x19   :  { %p794_p10 = scmp.ne.s32.totalorder %s43_s12, %s793_s13  ;;  %p799_p12 = scmp.lt.s32.totalorder %s793_s13, %s793_s13 }
  0x1b   :  { %p800_p13 = por %p799_p12, %p798_p11 }
  0x1d   :  { %p801_p0 = pnand %p800_p13, %p794_p10 }
  0x1f   :  { %804 = shalt.err (!%p801_p0)
}
  0x20   :  { %s834_s1 = smov 128   ;;  %s835_s14 = smov 8  }
  0x21   :  { %48 = dma.hbm_to_vmem [thread:$0]  %s907_s3, 4096, %s43_s12, [#allocation5], %s834_s1, %s834_s1, %s835_s14  }
  0x22   :  { %s836_s17 = smov [#allocation7]  }
  0x23   :  { %s56_s18 = sshll.u32 %s836_s17, 4  ;;  %s57_s18 = int_to_ptr.vmem [resolvable:$true] %s56_s18 }
  0x24   :  { %s813_s0 = scalar_lea.vmem %s57_s18, 2048  ;;  %p818_p2 = scmp.lt.s32.totalorder %s57_s18, %s57_s18 }
  0x25   :  { %p814_p1 = scmp.ne.s32.totalorder %s57_s18, %s813_s0  ;;  %p819_p3 = scmp.lt.s32.totalorder %s813_s0, %s813_s0 }
  0x27   :  { %p820_p4 = por %p819_p3, %p818_p2 }
  0x29   :  { %p821_p5 = pnand %p820_p4, %p814_p1 }
  0x2b   :  { %824 = shalt.err (!%p821_p5)
}
  0x2c   :  { %s837_s19 = smov 64   ;;  %s838_s20 = smov 4  }
  0x2d   :  { %62 = dma.hbm_to_vmem [thread:$0]  %s909_s5, 2048, %s57_s18, [#allocation8], %s837_s19, %s837_s19, %s838_s20  }
  0x2e   :  { %825 = dma.done.wait [#allocation3], 128  }
  0x2f   :  { %826 = vsyncadd [#allocation3], 4294967168 }
  0x30   :  { %827 = dma.done.wait [#allocation5], 4224  }
  0x31   :  { %828 = vsyncadd [#allocation5], 4294963072 }
  0x32   :  { %829 = dma.done.wait [#allocation8], 2048  }
  0x33   :  { %830 = vsyncadd [#allocation8], 4294965248  ;;  %v839_v0 = vmov 0   ;;  %v80_v1 = vld [vmem:[#allocation4] sm:$0xff]  ;;  %vm102_vm0 = vcmask 1043456   ;;  %v78_v2 = vld [vmem:[#allocation2] sm:$0xff]  ;;  %v83_v44 = vlaneseq }
  0x34   :  { %141 = vmatprep.mubr.bf16.mxu0 %v839_v0  ;;  %v588_v3 = vcombine.high %v80_v1, %v80_v1  ;;  %v587_v4 = vcombine.low %v80_v1, %v80_v1  ;;  %v673_v5 = vld [vmem:[#allocation6 + $0x74] ss:$8 sps:$4 sm:$0xff]   ;;  %v675_v6 = vld [vmem:[#allocation6 + $0x70] ss:$8 sps:$4 sm:$0xff]   ;;  %v676_v7 = vld [vmem:[#allocation6 + $0x64] ss:$8 sps:$4 sm:$0xff]   ;;  %v79_v9 = vpack.c.bf16 %v78_v2, %v78_v2 }
  0x35   :  { %358 = vmatprep.subr.bf16.mxu1 %v673_v5  ;;  %vm98_vm1 = vcmask 64512   ;;  %v678_v10 = vld [vmem:[#allocation6 + $0x60] ss:$8 sps:$4 sm:$0xff]   ;;  %v679_v11 = vld [vmem:[#allocation6 + $0x54] ss:$8 sps:$4 sm:$0xff]   ;;  %v84_v45 = vshrl.u32 %v83_v44, 7 }
  0x36   :  { %589 = vmatprep.subr.msk.bf16.mxu0 %vm102_vm0, %v588_v3  ;;  %v104_v8 = vsel %vm102_vm0, %v587_v4, 0  ;;  %359 = vmatpush1.bf16.msra.mxu1 %v675_v6  ;;  %v681_v12 = vld [vmem:[#allocation6 + $0x50] ss:$8 sps:$4 sm:$0xff]   ;;  %v682_v13 = vld [vmem:[#allocation6 + $0x44] ss:$8 sps:$4 sm:$0xff]   ;;  %vm578_vm2 = vcmask 15360  }
  0x37   :  { %124 = vmatpush1.bf16.msra.mxu0 %v104_v8  ;;  %360 = vmatprep.subr.bf16.mxu1 %v676_v7  ;;  %v684_v14 = vld [vmem:[#allocation6 + $0x40] ss:$8 sps:$4 sm:$0xff]   ;;  %v685_v15 = vld [vmem:[#allocation6 + $0x34] ss:$8 sps:$4 sm:$0xff]   ;;  %v687_v16 = vld [vmem:[#allocation6 + $0x30] ss:$8 sps:$4 sm:$0xff]  }
  0x38   :  { %v688_v17 = vld [vmem:[#allocation6 + $0x24] ss:$8 sps:$4 sm:$0xff]   ;;  %v690_v18 = vld [vmem:[#allocation6 + $0x20] ss:$8 sps:$4 sm:$0xff]   ;;  %v691_v19 = vld [vmem:[#allocation6 + $0x14] ss:$8 sps:$4 sm:$0xff]  }
  0x39   :  { %v693_v20 = vld [vmem:[#allocation6 + $0x10] ss:$8 sps:$4 sm:$0xff]   ;;  %v694_v21 = vld [vmem:[#allocation6 + $0x4] ss:$8 sps:$4 sm:$0xff]   ;;  %v696_v22 = vld [vmem:[#allocation6] ss:$8 sps:$4 sm:$0xff]  }
  0x3a   :  { %590 = vmatmul.mubr.msk.bf16.vlgmr.msra.gmra.mxu0 %vm98_vm1, %v79_v9  ;;  %361 = vmatpush1.bf16.msra.mxu1 %v678_v10  ;;  %v697_v23 = vld [vmem:[#allocation6 + $0xf4] ss:$8 sps:$4 sm:$0xff]   ;;  %v699_v24 = vld [vmem:[#allocation6 + $0xf0] ss:$8 sps:$4 sm:$0xff]   ;;  %v700_v25 = vld [vmem:[#allocation6 + $0xe4] ss:$8 sps:$4 sm:$0xff]  }
  0x3b   :  { %362 = vmatprep.subr.bf16.mxu1 %v679_v11  ;;  %v702_v26 = vld [vmem:[#allocation6 + $0xe0] ss:$8 sps:$4 sm:$0xff]   ;;  %v703_v27 = vld [vmem:[#allocation6 + $0xd4] ss:$8 sps:$4 sm:$0xff]   ;;  %v705_v28 = vld [vmem:[#allocation6 + $0xd0] ss:$8 sps:$4 sm:$0xff]  }
  0x3c   :  { %v706_v29 = vld [vmem:[#allocation6 + $0xc4] ss:$8 sps:$4 sm:$0xff]   ;;  %v708_v30 = vld [vmem:[#allocation6 + $0xc0] ss:$8 sps:$4 sm:$0xff]   ;;  %v709_v31 = vld [vmem:[#allocation6 + $0xb4] ss:$8 sps:$4 sm:$0xff]  }
  0x3d   :  { %v711_v32 = vld [vmem:[#allocation6 + $0xb0] ss:$8 sps:$4 sm:$0xff]   ;;  %v712_v33 = vld [vmem:[#allocation6 + $0xa4] ss:$8 sps:$4 sm:$0xff]   ;;  %v714_v34 = vld [vmem:[#allocation6 + $0xa0] ss:$8 sps:$4 sm:$0xff]  }
  0x3e   :  { %363 = vmatpush1.bf16.msra.mxu1 %v681_v12  ;;  %v715_v35 = vld [vmem:[#allocation6 + $0x94] ss:$8 sps:$4 sm:$0xff]   ;;  %v717_v36 = vld [vmem:[#allocation6 + $0x90] ss:$8 sps:$4 sm:$0xff]   ;;  %v718_v37 = vld [vmem:[#allocation6 + $0x84] ss:$8 sps:$4 sm:$0xff]  }
  0x3f   :  { %364 = vmatprep.subr.bf16.mxu1 %v682_v13  ;;  %v720_v38 = vld [vmem:[#allocation6 + $0x80] ss:$8 sps:$4 sm:$0xff]   ;;  %v721_v39 = vld [vmem:[#allocation7 + $0x78] sm:$0xff]   ;;  %v723_v41 = vld [vmem:[#allocation7 + $0x70] sm:$0xff]   ;;  %v85_v46 = vsub.s32 0, %v84_v45  ;;  %v89_v48 = vsub.s32 1, %v84_v45 }
  0x40   :  { %v722_v40 = vld [vmem:[#allocation7 + $0x38] sm:$0xff]   ;;  %640 = vmatprep.subr.bf16.mxu0 %v721_v39  ;;  %v724_v42 = vld [vmem:[#allocation7 + $0x30] sm:$0xff]   ;;  %v725_v43 = vld [vmem:[#allocation7 + $0x68] sm:$0xff]  }
  0x41   :  { %641 = vmatpush3.bf16.msra.mxu0 %v722_v40  ;;  %v81_v47 = vld [vmem:[%s906_s2] sm:$0x3]  ;;  %v726_v61 = vld [vmem:[#allocation7 + $0x28] sm:$0xff]   ;;  %v727_v62 = vld [vmem:[#allocation7 + $0x60] sm:$0xff]  }
  0x42   :  { %365 = vmatpush1.bf16.msra.mxu1 %v684_v14  ;;  %642 = vmatprep.subr.bf16.mxu0 %v723_v41  ;;  %v86_v49 = vrot.slane %v81_v47, %v85_v46  ;;  %v90_v50 = vrot.slane %v81_v47, %v89_v48  ;;  %v728_v63 = vld [vmem:[#allocation7 + $0x20] sm:$0xff]   ;;  %v729_v0 = vld [vmem:[#allocation7 + $0x58] sm:$0xff]   ;;  %v731_v2 = vld [vmem:[#allocation7 + $0x50] sm:$0xff]  }
  0x43   :  { %366 = vmatprep.subr.bf16.mxu1 %v685_v15  ;;  %v730_v1 = vld [vmem:[#allocation7 + $0x18] sm:$0xff]   ;;  %v732_v3 = vld [vmem:[#allocation7 + $0x10] sm:$0xff]   ;;  %v733_v4 = vld [vmem:[#allocation7 + $0x48] sm:$0xff]  }
  0x44   :  { %v734_v5 = vld [vmem:[#allocation7 + $0x8] sm:$0xff]   ;;  %v735_v6 = vld [vmem:[#allocation7 + $0x40] sm:$0xff]   ;;  %v186_v8 = vld [vmem:[%s908_s4] sm:$0x3] }
  0x45   :  { %643 = vmatpush3.bf16.msra.mxu0 %v724_v42  ;;  %v736_v7 = vld [vmem:[#allocation7] sm:$0xff]   ;;  %v191_v9 = vrot.slane %v186_v8, %v85_v46  ;;  %v195_v10 = vrot.slane %v186_v8, %v89_v48 }
  0x46   :  { %367 = vmatpush1.bf16.msra.mxu1 %v687_v16  ;;  %644 = vmatprep.subr.bf16.mxu0 %v725_v43 }
  0x47   :  { %368 = vmatprep.subr.bf16.mxu1 %v688_v17 }
  0x49   :  { %645 = vmatpush3.bf16.msra.mxu0 %v726_v61 }
  0x4a   :  { %369 = vmatpush1.bf16.msra.mxu1 %v690_v18  ;;  %646 = vmatprep.subr.bf16.mxu0 %v727_v62 }
  0x4b   :  { %370 = vmatprep.subr.bf16.mxu1 %v691_v19 }
  0x4d   :  { %647 = vmatpush3.bf16.msra.mxu0 %v728_v63 }
  0x4e   :  { %371 = vmatpush1.bf16.msra.mxu1 %v693_v20  ;;  %648 = vmatprep.subr.bf16.mxu0 %v729_v0 }
  0x4f   :  { %372 = vmatprep.subr.bf16.mxu1 %v694_v21 }
  0x51   :  { %649 = vmatpush3.bf16.msra.mxu0 %v730_v1 }
  0x52   :  { %373 = vmatpush1.bf16.msra.mxu1 %v696_v22  ;;  %650 = vmatprep.subr.bf16.mxu0 %v731_v2  ;;  %v623_v22 = vld [vmem:[%s910_s6] ss:$0 sm:$0xff] }
  0x53   :  { %374 = vmatprep.subr.bf16.mxu1 %v697_v23 }
  0x55   :  { %651 = vmatpush3.bf16.msra.mxu0 %v732_v3 }
  0x56   :  { %375 = vmatpush2.bf16.msra.mxu1 %v699_v24  ;;  %652 = vmatprep.subr.bf16.mxu0 %v733_v4 }
  0x57   :  { %376 = vmatprep.subr.bf16.mxu1 %v700_v25 }
  0x59   :  { %653 = vmatpush3.bf16.msra.mxu0 %v734_v5 }
  0x5a   :  { %377 = vmatpush2.bf16.msra.mxu1 %v702_v26  ;;  %654 = vmatprep.subr.bf16.mxu0 %v735_v6 }
  0x5b   :  { %378 = vmatprep.subr.bf16.mxu1 %v703_v27 }
  0x5d   :  { %655 = vmatpush3.bf16.msra.mxu0 %v736_v7 }
  0x5e   :  { %379 = vmatpush2.bf16.msra.mxu1 %v705_v28 }
  0x5f   :  { %380 = vmatprep.subr.bf16.mxu1 %v706_v29 }
  0x62   :  { %381 = vmatpush2.bf16.msra.mxu1 %v708_v30 }
  0x63   :  { %382 = vmatprep.subr.bf16.mxu1 %v709_v31 }
  0x66   :  { %383 = vmatpush2.bf16.msra.mxu1 %v711_v32 }
  0x67   :  { %384 = vmatprep.subr.bf16.mxu1 %v712_v33 }
  0x6a   :  { %385 = vmatpush2.bf16.msra.mxu1 %v714_v34 }
  0x6b   :  { %386 = vmatprep.subr.bf16.mxu1 %v715_v35 }
  0x6e   :  { %387 = vmatpush2.bf16.msra.mxu1 %v717_v36 }
  0x6f   :  { %388 = vmatprep.subr.bf16.mxu1 %v718_v37 }
  0x72   :  { %389 = vmatpush2.bf16.msra.mxu1 %v720_v38 }
  0xfa   :  { %v143_v51 = vpop.f32.mrf.mxu0 }
  0xfb   :  { %v144_v52 = vadd.f32 %v143_v51, %v86_v49 }
  0xfc   :  { %v145_v53 = vpop.f32.mrf.mxu0 }
  0xfd   :  { %v146_v54 = vadd.f32 %v145_v53, %v90_v50  ;;  %v150_v55 = vpack.c.bf16 %v144_v52, %v144_v52 }
  0xfe   :  { %v147_v56 = vpop.f32.mrf.mxu0 }
  0xff   :  { %v151_v57 = vpack.c.bf16 %v146_v54, %v146_v54 }
 0x100   :  { %v148_v58 = vpop.f32.mrf.mxu0 }
 0x101   :  { %737 = vtanh.bf16 %v151_v57 }
 0x102   :  { %739 = vtanh.bf16 %v150_v55 }
 0x10f   :  { %v738_v59 = vpop.eup %737 }
 0x110   :  { %v740_v60 = vpop.eup %739  ;;  %390 = vmatprep.mubr.bf16.mxu1 %v738_v59 }
 0x111   :  { %391 = vmatmul.mubr.bf16.vlgmr.msra.gmra.mxu1 %v740_v60 }
 0x1d1   :  { %v392_v11 = vpop.f32.mrf.mxu1 }
 0x1d2   :  { %v393_v12 = vadd.f32 %v392_v11, %v191_v9 }
 0x1d3   :  { %v394_v13 = vpop.f32.mrf.mxu1 }
 0x1d4   :  { %v395_v14 = vadd.f32 %v394_v13, %v195_v10  ;;  %v399_v15 = vpack.c.bf16 %v393_v12, %v393_v12 }
 0x1d5   :  { %v396_v16 = vpop.f32.mrf.mxu1 }
 0x1d6   :  { %v400_v17 = vpack.c.bf16 %v395_v14, %v395_v14 }
 0x1d7   :  { %v397_v18 = vpop.f32.mrf.mxu1 }
 0x1d8   :  { %741 = vtanh.bf16 %v400_v17 }
 0x1d9   :  { %743 = vtanh.bf16 %v399_v15 }
 0x1e6   :  { %v742_v19 = vpop.eup %741 }
 0x1e7   :  { %v744_v20 = vpop.eup %743  ;;  %570 = vmatprep.mubr.bf16.mxu0 %v742_v19 }
 0x1e8   :  { %571 = vmatmul.mubr.bf16.vlgmr.msra.gmra.mxu0 %v744_v20 }
 0x2a8   :  { %v656_v21 = vpop.f32.mrf.mxu0 }
 0x2aa   :  { %v657_v23 = vpop.f32.mrf.mxu0 }
 0x2ab   :  { %v658_v24 = vadd.f32 %v657_v23, %v656_v21 }
 0x2ac   :  { %v659_v25 = vpop.f32.mrf.mxu0 }
 0x2ad   :  { %v573_v26 = vadd.f32 %v658_v24, %v623_v22 }
 0x2ae   :  { %v660_v27 = vpop.f32.mrf.mxu0 }
 0x2af   :  { %579 = vst.msk [vmem:[%s911_s7] sm:$0xff] %vm578_vm2, %v573_v26 }
 0x2b0   :  { %584 = vsyncpa [#allocation3], 1 }
 0x2b1   :  { %585 = vsyncpa [#allocation5], 1 }
 0x2b2   :  { %586 = vsyncpa [#allocation8], 1 }

</bundles_post_ra>
